<compile_context>
chip_gen: v5e
topology: v5e:2x2
jax: 0.10.0
libtpu: 0.0.40
codegen_flags: <defaults>
</compile_context>

<pallas_src>
import jax
import jax.numpy as jnp
from jax import lax
from jax.experimental import pallas as pl
from jax.experimental.pallas import tpu as pltpu

_LANE = 128          # vreg lane count: tiled lane dims must be multiples of this
_MAX_TB = 32768      # soft cap on the batch tile (rows); plenty to hit HBM roofline


def _round_up(x, m):
    return ((x + m - 1) // m) * m


def _vmem_budget_bytes():
    """~75% of physical VMEM (headroom for compiler-internal scratch).

    v7x (64 MiB/TC) -> 48 MiB;  v5e/v6e (128 MiB) -> 96 MiB;  unknown -> 48 MiB.
    """
    phys = 64 * 1024 * 1024  # conservative default (v7x per-TC VMEM)
    try:
        info = pltpu.get_tpu_info()
        phys = int(getattr(info, "vmem_capacity_bytes", phys) or phys)
    except Exception:
        pass
    return (phys * 3) // 4


# ---------------------------------------------------------------------------
# Kernels.  Both compute the transposed linear  y^T = W @ x^T + b  so that the
# output block (outSize, tb) is lane-dense (tb is a multiple of 128 or == B).
# ---------------------------------------------------------------------------

def _linear_t_kernel(x_ref, w_ref, b_ref, yt_ref):
    # x_ref: (tb, in)  w_ref: (out, in)  b_ref: (out, 1)  yt_ref: (out, tb)
    acc = lax.dot_general(
        w_ref[...], x_ref[...],
        dimension_numbers=(((1,), (1,)), ((), ())),   # contract inSize (trans_b form)
        preferred_element_type=jnp.float32,
    )
    yt_ref[...] = (acc + b_ref[...].astype(jnp.float32)).astype(yt_ref.dtype)


def _linear_t_kernel_ktiled(x_ref, w_ref, b_ref, yt_ref, acc_ref):
    # Grid = (batch tiles, K tiles); K is last, output block is constant over K.
    k = pl.program_id(1)

    @pl.when(k == 0)
    def _init():
        acc_ref[...] = jnp.zeros_like(acc_ref)

    acc_ref[...] += lax.dot_general(
        w_ref[...], x_ref[...],
        dimension_numbers=(((1,), (1,)), ((), ())),
        preferred_element_type=jnp.float32,
    )

    @pl.when(k == pl.num_programs(1) - 1)
    def _finalize():
        yt_ref[...] = (acc_ref[...] + b_ref[...].astype(jnp.float32)).astype(yt_ref.dtype)


# ---------------------------------------------------------------------------
# Tile selection from the VMEM budget.
# ---------------------------------------------------------------------------

def _choose_tiles(B, in_size, out_size, x_item, w_item, budget):
    """Pick (tb, tk, num_k) so the double-buffered working set fits `budget`."""
    # --- feature (K) tile: keep the full inSize resident if it fits easily ---
    full_k_cost = 2 * _LANE * in_size * x_item + out_size * in_size * w_item
    if full_k_cost <= budget // 2:
        tk = in_size
    else:
        # Very wide features: stream K in lane-aligned chunks (W then needs
        # the default double buffering).
        per_k_col = 2 * _LANE * x_item + 2 * out_size * w_item
        tk = (budget // 2 // per_k_col // _LANE) * _LANE
        tk = int(max(_LANE, tk))
        if tk >= in_size:
            tk = in_size
    num_k = -(-in_size // tk)

    # --- batch tile from the remaining budget ---
    w_bufs = 1 if num_k == 1 else 2                     # resident vs. streamed W
    fixed = w_bufs * out_size * tk * w_item + out_size * w_item
    per_row = (2 * tk * x_item                          # x tile, double buffered
               + 2 * out_size * x_item                  # y^T tile, double buffered
               + (out_size * 4 if num_k > 1 else 0))    # f32 accumulator scratch
    tb = max(_LANE, (budget - fixed) // per_row)
    tb = min(tb, _MAX_TB)

    # --- legalize: tb must be a multiple of 128 (lane dim of y^T) or == B ---
    if B <= _LANE or tb >= B:
        tb = B
    else:
        tb = max(_LANE, (tb // _LANE) * _LANE)

    # --- megacore: give the "parallel" batch axis >= 2 tiles when possible ---
    if B >= 2 * _LANE:
        tb = min(tb, _round_up(-(-B // 2), _LANE))

    return int(tb), int(tk), int(num_k)


# ---------------------------------------------------------------------------
# Public wrapper: equivalent of nn.Linear(inSize, outSize)(x) == x @ W.T + b.
# ---------------------------------------------------------------------------

def logistic_regression_forward(x, weight, bias, *, compute_dtype=None,
                                allow_xla_fallback=True):
    """x: (..., inSize), weight: (outSize, inSize), bias: (outSize,) -> (..., outSize)."""
    out_size, in_size = weight.shape
    orig_lead = x.shape[:-1]
    out_dtype = x.dtype
    x2 = x.reshape(-1, in_size)
    B = x2.shape[0]

    # Tiny problems: pallas_call dispatch + per-grid-step overhead dwarfs the
    # compute -> a plain XLA dot is strictly faster.
    if allow_xla_fallback and B * in_size * out_size < (1 << 20):
        y = jnp.dot(x2, weight.T, preferred_element_type=jnp.float32)
        y = (y + bias.astype(jnp.float32)).astype(out_dtype)
        return y.reshape(*orig_lead, out_size)

    # Optional reduced-precision streaming (memory-bound kernel); f32 accumulate.
    if compute_dtype is not None:
        x2 = x2.astype(compute_dtype)
        weight = weight.astype(compute_dtype)

    x_item = jnp.dtype(x2.dtype).itemsize
    w_item = jnp.dtype(weight.dtype).itemsize
    budget = _vmem_budget_bytes()
    tb, tk, num_k = _choose_tiles(B, in_size, out_size, x_item, w_item, budget)

    # K-tiling feeds padded feature columns into the accumulation, so they must
    # be zero: pad x / W up to a multiple of tk.
    if num_k > 1 and in_size % tk != 0:
        pad = num_k * tk - in_size
        x2 = jnp.pad(x2, ((0, 0), (0, pad)))
        weight = jnp.pad(weight, ((0, 0), (0, pad)))

    bias2 = bias.reshape(out_size, 1)
    num_b = -(-B // tb)

    cost = pl.CostEstimate(
        flops=2 * B * in_size * out_size,
        transcendentals=0,
        bytes_accessed=(B * in_size * x_item
                        + out_size * in_size * w_item
                        + out_size * jnp.dtype(bias.dtype).itemsize
                        + B * out_size * jnp.dtype(out_dtype).itemsize),
    )

    if num_k == 1:
        in_pad = x2.shape[1]
        grid = (num_b,)
        in_specs = [
            pl.BlockSpec((tb, in_pad), lambda i: (i, 0)),               # x: streamed over batch
            pl.BlockSpec((out_size, in_pad), lambda i: (0, 0),
                         pipeline_mode=pl.Buffered(1)),                 # W: resident, 1 buffer
            pl.BlockSpec((out_size, 1), lambda i: (0, 0),
                         pipeline_mode=pl.Buffered(1)),                 # b: resident, 1 buffer
        ]
        out_specs = pl.BlockSpec((out_size, tb), lambda i: (0, i))
        scratch_shapes = ()
        kernel = _linear_t_kernel
        dims = ("parallel",)
    else:
        grid = (num_b, num_k)
        in_specs = [
            pl.BlockSpec((tb, tk), lambda i, k: (i, k)),
            pl.BlockSpec((out_size, tk), lambda i, k: (0, k)),
            pl.BlockSpec((out_size, 1), lambda i, k: (0, 0),
                         pipeline_mode=pl.Buffered(1)),
        ]
        out_specs = pl.BlockSpec((out_size, tb), lambda i, k: (0, i))
        scratch_shapes = (pltpu.VMEM((out_size, tb), jnp.float32),)
        kernel = _linear_t_kernel_ktiled
        dims = ("parallel", "arbitrary")

    yt = pl.pallas_call(
        kernel,
        out_shape=jax.ShapeDtypeStruct((out_size, B), out_dtype),
        grid_spec=pltpu.PrefetchScalarGridSpec(
            num_scalar_prefetch=0,
            grid=grid,
            in_specs=in_specs,
            out_specs=out_specs,
            scratch_shapes=scratch_shapes,
        ),
        compiler_params=pltpu.CompilerParams(
            dimension_semantics=dims,
            vmem_limit_bytes=int(budget),
        ),
        cost_estimate=cost,
    )(x2, weight, bias2)

    # (outSize, B) -> (B, outSize): one cheap pass over the small output, far
    # cheaper than lane-sparse masked stores inside the kernel.
    return yt.T.reshape(*orig_lead, out_size)


if __name__ == "__main__":
    # Small shapes consistent with the module: inSize=32 features -> outSize=4
    # classes; batch 256 gives two 128-row batch tiles, exercising the
    # streaming pipeline and the 2-tile megacore split.
    B, IN_SIZE, OUT_SIZE = 256, 32, 4

    key = jax.random.PRNGKey(0)
    kx, kw, kb = jax.random.split(key, 3)

    x = jax.random.normal(kx, (B, IN_SIZE), dtype=jnp.float32)
    # Deterministic nn.Linear-style init: uniform(-1/sqrt(in), 1/sqrt(in)).
    bound = 1.0 / (IN_SIZE ** 0.5)
    weight = jax.random.uniform(kw, (OUT_SIZE, IN_SIZE), minval=-bound,
                                maxval=bound, dtype=jnp.float32)
    bias = jax.random.uniform(kb, (OUT_SIZE,), minval=-bound, maxval=bound,
                              dtype=jnp.float32)

    ref = x @ weight.T + bias

    # Force the Pallas path (the auto-dispatcher would pick the plain XLA dot
    # for a problem this tiny).
    out = logistic_regression_forward(x, weight, bias, allow_xla_fallback=False)
    out = jax.block_until_ready(out)
    assert out.shape == (B, OUT_SIZE)
    assert jnp.allclose(out, ref, atol=1e-4, rtol=1e-4), "f32 Pallas path mismatch"

    # Optional bf16 streaming path (f32 accumulation) -- looser tolerance.
    out_bf16 = logistic_regression_forward(x, weight, bias,
                                           compute_dtype=jnp.bfloat16,
                                           allow_xla_fallback=False)
    out_bf16 = jax.block_until_ready(out_bf16)
    assert jnp.allclose(out_bf16, ref, atol=1e-1, rtol=1e-1), "bf16 Pallas path mismatch"

    # Default auto path: tiny problem -> plain XLA dot (no Pallas dispatch).
    out_auto = jax.block_until_ready(logistic_regression_forward(x, weight, bias))
    assert jnp.allclose(out_auto, ref, atol=1e-4, rtol=1e-4)

    print("KERNEL_OK")
</pallas_src>

<mosaic_0001>
module attributes {stable_mosaic.version = 11 : i64} {
  func.func @_linear_t_kernel(%arg0: i32, %arg1: memref<128x32xf32, #tpu.memory_space<vmem>>, %arg2: memref<4x32xf32, #tpu.memory_space<vmem>>, %arg3: memref<4x1xf32, #tpu.memory_space<vmem>>, %arg4: memref<4x128xf32, #tpu.memory_space<vmem>>) attributes {dimension_semantics = [#tpu.dimension_semantics<parallel>], iteration_bounds = array<i64: 2>, scalar_prefetch = 0 : i64, scratch_operands = 0 : i64, tpu.core_type = #tpu.core_type<tc>, window_params = [{transform_indices = @transform_0, window_bounds = array<i64: 128, 32>}, {pipeline_mode = #tpu.pipeline_mode<synchronous>, transform_indices = @transform_1, window_bounds = array<i64: 4, 32>}, {pipeline_mode = #tpu.pipeline_mode<synchronous>, transform_indices = @transform_2, window_bounds = array<i64: 4, 1>}, {transform_indices = @transform_3, window_bounds = array<i64: 4, 128>}]} {
    %c0 = arith.constant 0 : index
    %c0_0 = arith.constant 0 : index
    %0 = vector.load %arg2[%c0, %c0_0] : memref<4x32xf32, #tpu.memory_space<vmem>>, vector<4x32xf32>
    %c0_1 = arith.constant 0 : index
    %c0_2 = arith.constant 0 : index
    %1 = vector.load %arg1[%c0_1, %c0_2] : memref<128x32xf32, #tpu.memory_space<vmem>>, vector<128x32xf32>
    %cst = arith.constant dense<0.000000e+00> : vector<4x128xf32>
    %2 = tpu.matmul %0, %1, %cst {dimension_numbers = #tpu.dot_dimension_numbers<[1], [1], [0], [0], [0, 0, 1, 0], [], []>} : vector<4x32xf32>, vector<128x32xf32>, vector<4x128xf32> -> vector<4x128xf32>
    %c0_3 = arith.constant 0 : index
    %c0_4 = arith.constant 0 : index
    %3 = vector.load %arg3[%c0_3, %c0_4] : memref<4x1xf32, #tpu.memory_space<vmem>>, vector<4x1xf32>
    %4 = vector.broadcast %3 : vector<4x1xf32> to vector<4x128xf32>
    %5 = arith.addf %2, %4 : vector<4x128xf32>
    %c0_5 = arith.constant 0 : index
    %c0_6 = arith.constant 0 : index
    %6 = vector.load %arg4[%c0_5, %c0_6] : memref<4x128xf32, #tpu.memory_space<vmem>>, vector<4x128xf32>
    tpu.vector_store %arg4[%c0_5, %c0_6], %5 {strides = array<i32>} : memref<4x128xf32, #tpu.memory_space<vmem>>, vector<4x128xf32>,
    return
  }
  func.func @transform_0(%arg0: i32) -> (i32, i32) {
    %c0_i32 = arith.constant 0 : i32
    %c0_i32_0 = arith.constant 0 : i32
    return %arg0, %c0_i32 : i32, i32
  }
  func.func @transform_1(%arg0: i32) -> (i32, i32) {
    %c0_i32 = arith.constant 0 : i32
    %c0_i32_0 = arith.constant 0 : i32
    %c0_i32_1 = arith.constant 0 : i32
    return %c0_i32, %c0_i32_0 : i32, i32
  }
  func.func @transform_2(%arg0: i32) -> (i32, i32) {
    %c0_i32 = arith.constant 0 : i32
    %c0_i32_0 = arith.constant 0 : i32
    %c0_i32_1 = arith.constant 0 : i32
    return %c0_i32, %c0_i32_0 : i32, i32
  }
  func.func @transform_3(%arg0: i32) -> (i32, i32) {
    %c0_i32 = arith.constant 0 : i32
    %c0_i32_0 = arith.constant 0 : i32
    return %c0_i32, %arg0 : i32, i32
  }
}

</mosaic_0001>

<bundles_post_ra>
// kernel: tpu_custom_call.1
= control target key start
LH: loop header
LB: loop body
LE: loop exit
PB: predicated region body
PF: predicated region fallthrough
CT: control target
= control target key end

     0   :  { %8 = vsyncpa [#allocation3], 0  ;;  %s621_s0 = inlined_call_operand.vmem [shape: f32[256,32], index: 0, kind: input, shape index: {}]   ;;  %s622_s1 = inlined_call_operand.vmem [shape: f32[4,32], index: 1, kind: input, shape index: {}]   ;;  %s623_s2 = inlined_call_operand.vmem [shape: f32[4,1], index: 2, kind: input, shape index: {}]   ;;  %s624_s3 = inlined_call_operand.hbm [shape: f32[4,256], index: 3, kind: output, shape index: {}]  }
   0x1   :  { %10 = vsyncpa [#allocation3 + $0x1], 0  ;;  %s496_s12 = smov 0   ;;  %s498_s13 = smov 0  }
   0x2   :  { %s500_s14 = smov 0   ;;  %s502_s15 = smov 0  }
   0x3 LB: > { %s517_s16 = sadd.s32 4294967295, %s473_s15   ;;  %s342_s17 = sadd.s32 4294967294, %s473_s15   ;;  %s473_s15 = sphi %s502_s15, %s630_s15   ;;  %s469_s14 = sphi %s500_s14, %s629_s14   ;;  %s465_s13 = sphi %s498_s13, %s628_s13   ;;  %s461_s12 = sphi %s496_s12, %s627_s12  }
   0x4   : > { %s521_s18 = sadd.s32 1, %s473_s15   ;;  %s91_s19 = sadd.s32 1, %s469_s14 }
   0x5   : > { %s88_s20 = ssub.s32 %s473_s15, %s521_s18  ;;  %p101_p0 = scmp.ne.s32.totalorder %s469_s14, %s465_s13 }
   0x6   : > { %p89_p1 = scmp.eq.s32.totalorder %s88_s20, 0  ;;  %p102_p2 = scmp.eq.s32.totalorder %s517_s16, 1 }
   0x7   : > { %p107_p3 = scmp.ne.s32.totalorder %s465_s13, %s461_s12  ;;  %p108_p4 = scmp.eq.s32.totalorder %s342_s17, 1 }
   0x8   : > { %s532_s21 = scalar_select %p89_p1, %s469_s14, %s91_s19  }
   0x9   : > { %p534_p5 = por %p102_p2, %p101_p0  ;;  %p538_p6 = por %p108_p4, %p107_p3 }
   0xa   : > { %p345_p7 = scmp.ge.s32.totalorder %s473_s15, 1  ;;  %p141_p8 = scmp.lt.s32.totalorder %s473_s15, 3 }
   0xc   : > { %p142_p9 = pnand %p345_p7, %p141_p8 }
   0xd   : > { %s347_s24 = sshll.u32 (!%p142_p9), %s517_s16, 4  ;;  %s162_s6 = sand.u32 (!%p142_p9), 1, %s465_s13  }
   0xe   : > { %145 = sbr.rel (%p142_p9) target bundleno = 217 (0xd9), region = 32  ;;  %p166_p10 = scmp.lt.s32.totalorder (!%p142_p9), %s347_s24, 31 }
   0xf   : > { %s346_s7 = sshll.u32 (!%p142_p9), %s162_s6, 2  ;;  %s367_s8 = sshll.u32 (!%p142_p9), %s517_s16, 2 }
  0x10   : > { %s278_s11 = scalar_lea.hbm (!%p142_p9), %s624_s3, %s367_s8  ;;  %s164_s17 = scalar_lea.vmem (!%p142_p9), [#allocation2], %s346_s7 }
  0x11   : > { %s280_s19 = sshll.u32 (!%p142_p9), %s164_s17, 4  ;;  %s282_s20 = sshll.u32 (!%p142_p9), %s278_s11, 4  ;;  %s281_s19 = int_to_ptr.vmem [resolvable:$true] %s280_s19  ;;  %s283_s20 = int_to_ptr.hbm [resolvable:$true] %s282_s20 }
  0x13   : > { %s632_s24 = smov (!%p166_p10, %s347_s24), 31  ;;  %vm194_vm0 = vcmask 261120   ;;  %v188_v9 = vld [vmem:[%s623_s2] sm:$0xf]  ;;  %v475_v10 = vmov 0  }
  0x14   : > { %s348_s25 = sshll.u32 %s632_s24, 3  ;;  %410 = vset.pattern.permute.xlu0 %v475_v10  ;;  %v171_v18 = vld [vmem:[%s622_s1] sm:$0xf]  ;;  %s268_s24 = scalar_lea.sflag [#allocation3], %s162_s6 }
  0x15   : > { %s548_s28 = scalar_lea.vmem %s621_s0, %s348_s25  ;;  %191 = vperm.xlu0 %410, %v188_v9   ;;  %s425_s25 = sshra.s32 %s283_s20, 4  ;;  %s426_s25 = int_to_ptr.hbm [resolvable:$true] %s425_s25 }
  0x16   : > { %v187_v0 = vld [vmem:[%s548_s28 + $0x78] sm:$0xff]  ;;  %v186_v1 = vld [vmem:[%s548_s28 + $0x70] sm:$0xff]  ;;  %v185_v2 = vld [vmem:[%s548_s28 + $0x68] sm:$0xff]  ;;  %s427_s26 = scalar_lea.hbm %s426_s25, 4  ;;  %p432_p0 = scmp.lt.s32.totalorder %s426_s25, %s624_s3 }
  0x17   : > { %349 = vmatpush.xpose.msk.msra.mxu0 %vm194_vm0, %v187_v0  ;;  %v184_v3 = vld [vmem:[%s548_s28 + $0x60] sm:$0xff]  ;;  %v183_v4 = vld [vmem:[%s548_s28 + $0x58] sm:$0xff]  ;;  %v182_v5 = vld [vmem:[%s548_s28 + $0x50] sm:$0xff]  ;;  %p428_p11 = scmp.ne.s32.totalorder %s426_s25, %s427_s26 }
  0x18   : > { %v181_v6 = vld [vmem:[%s548_s28 + $0x48] sm:$0xff]  ;;  %v180_v7 = vld [vmem:[%s548_s28 + $0x40] sm:$0xff]  ;;  %v179_v8 = vld [vmem:[%s548_s28 + $0x38] sm:$0xff] }
  0x19   : > { %v178_v11 = vld [vmem:[%s548_s28 + $0x30] sm:$0xff]  ;;  %v177_v12 = vld [vmem:[%s548_s28 + $0x28] sm:$0xff]  ;;  %v176_v13 = vld [vmem:[%s548_s28 + $0x20] sm:$0xff]  ;;  %p429_p12 = pnand %p428_p11, %p534_p5 }
  0x1a   : > { %v175_v14 = vld [vmem:[%s548_s28 + $0x18] sm:$0xff]  ;;  %v174_v15 = vld [vmem:[%s548_s28 + $0x10] sm:$0xff]  ;;  %v173_v16 = vld [vmem:[%s548_s28 + $0x8] sm:$0xff] }
  0x1b   : > { %350 = vmatpush.xpose.msk.msra.mxu0 %vm194_vm0, %v186_v1  ;;  %v172_v17 = vld [vmem:[%s548_s28] sm:$0xff]  ;;  %p430_p13 = pneg %p429_p12  ;;  %s431_s28 = scalar_lea.hbm %s624_s3, 8 }
  0x1c   : > { %p433_p1 = scmp.lt.s32.totalorder %s431_s28, %s427_s26 }
  0x1e   : > { %p434_p2 = por %p433_p1, %p432_p0 }
  0x1f   : > { %351 = vmatpush.xpose.msk.msra.mxu0 %vm194_vm0, %v185_v2 }
  0x20   : > { %p435_p3 = pnand %p434_p2, %p430_p13 }
  0x23   : > { %352 = vmatpush.xpose.msk.msra.mxu0 %vm194_vm0, %v184_v3 }
  0x27   : > { %353 = vmatpush.xpose.msk.msra.mxu0 %vm194_vm0, %v183_v4 }
  0x2b   : > { %354 = vmatpush.xpose.msk.msra.mxu0 %vm194_vm0, %v182_v5 }
  0x2f   : > { %355 = vmatpush.xpose.msk.msra.mxu0 %vm194_vm0, %v181_v6 }
  0x33   : > { %356 = vmatpush.xpose.msk.msra.mxu0 %vm194_vm0, %v180_v7 }
  0x37   : > { %357 = vmatpush.xpose.msk.msra.mxu0 %vm194_vm0, %v179_v8 }
  0x3b   : > { %358 = vmatpush.xpose.msk.msra.mxu0 %vm194_vm0, %v178_v11 }
  0x3f   : > { %359 = vmatpush.xpose.msk.msra.mxu0 %vm194_vm0, %v177_v12 }
  0x43   : > { %360 = vmatpush.xpose.msk.msra.mxu0 %vm194_vm0, %v176_v13 }
  0x47   : > { %361 = vmatpush.xpose.msk.msra.mxu0 %vm194_vm0, %v175_v14 }
  0x4b   : > { %362 = vmatpush.xpose.msk.msra.mxu0 %vm194_vm0, %v174_v15 }
  0x4f   : > { %363 = vmatpush.xpose.msk.msra.mxu0 %vm194_vm0, %v173_v16 }
  0x53   : > { %364 = vmatpush.xpose.msk.msra.mxu0 %vm194_vm0, %v172_v17 }
  0x56   : > { %365 = vmatmul.msk.f32.vlgmr.msra.gmra.mxu0 %vm194_vm0, %v171_v18 }
  0x87   : > { %v192_v19 = vpop.permute.xlu0 %191 }
  0xd3   : > { %v263_v20 = vpop.f32.mrf.mxu0 }
  0xd4   : > { %v264_v21 = vadd.f32 %v263_v20, %v192_v19 }
  0xd6   : > { %266 = vst [vmem:[%s164_s17] sm:$0xf] %v264_v21 }
  0xd7   : > { %438 = shalt.err (!%p435_p3)
}
  0xd8   : > { %370 = dma.vmem_to_hbm [thread:$0]  (%p534_p5), %s281_s19, 64, %s283_s20, %s268_s24  }
  0xd9 PF: > { %p376_p4 = scmp.ge.s32.totalorder %s473_s15, 2  ;;  %s294_s4 = sand.u32 1, %s461_s12  }
  0xda   : > { %s295_s5 = scalar_lea.sflag [#allocation3], %s294_s4 }
  0xdb   : > { %p373_p7 = pnand %p376_p4, %p538_p6 }
  0xdd   : > { %p374_p8 = pneg %p373_p7 }
  0xdf   : > { %456 = dma.done.wait (%p374_p8), %s295_s5, 64  }
  0xe0   : > { %458 = vsyncadd (%p374_p8), %s295_s5, 4294967232  ;;  %p13_p9 = scmp.ge.s32.totalorder %s521_s18, 4   ;;  %s627_s12 = smov %s465_s13 }
  0xe1   : > { %s628_s13 = smov %s469_s14  ;;  %s629_s14 = smov %s532_s21 }
  0xe2   : > { %s630_s15 = smov %s521_s18  ;;  %15 = sbr.rel (!%p13_p9) target bundleno = 3 (0x3), region = 67 }
  0xe7   :  { %301 = vsyncpa [#allocation3], 1 }
  0xe8   :  { %303 = vsyncpa [#allocation3 + $0x1], 1 }

</bundles_post_ra>
